<compile_context>
chip_gen: v5e
topology: v5e:2x2
jax: 0.10.0
libtpu: 0.0.40
codegen_flags: <defaults>
</compile_context>

<pallas_src>
import jax
import jax.numpy as jnp
from jax.experimental import pallas as pl
from jax.experimental.pallas import tpu as pltpu

HIDDEN = 256
OUT_PAD = 128          # lane-aligned padded width of the final (256 -> 1) layer RHS
MAX_BATCH_TILE = 1024  # rows per grid step


def _round_up(n, m):
    return ((n + m - 1) // m) * m


def critic_mlp_kernel(x_ref, w1_ref, b1_ref, w2_ref, b2_ref, w3_ref, b3_ref, o_ref):
    """Fused 3-layer MLP on one (TB, D) batch tile.

    bf16 MXU operands, f32 accumulation, f32 bias-add / ReLU, (TB, 1) output store.
    """
    x = x_ref[...].astype(jnp.bfloat16)                                   # cast in-kernel (VPU)
    h1 = jnp.dot(x, w1_ref[...], preferred_element_type=jnp.float32)      # (TB, 256) f32
    h1 = jnp.maximum(h1 + b1_ref[...], 0.0)
    h2 = jnp.dot(h1.astype(jnp.bfloat16), w2_ref[...],
                 preferred_element_type=jnp.float32)                      # (TB, 256) f32
    h2 = jnp.maximum(h2 + b2_ref[...], 0.0)
    v = jnp.dot(h2.astype(jnp.bfloat16), w3_ref[...],
                preferred_element_type=jnp.float32)                       # (TB, 128) f32
    # Store only the real value column; the other 127 lanes are MXU slack, never
    # written back to HBM.
    o_ref[...] = (v[:, :1] + b3_ref[...]).astype(o_ref.dtype)             # (TB, 1)


@jax.jit
def critic_forward(x, params):
    """CriticNet forward. x: (batch, input_dims) f32 -> (batch, 1) f32."""
    w1, b1, w2, b2, w3, b3 = params
    batch, d = x.shape

    # Tile the batch. For batch <= 128 a single full-array tile is used (block ==
    # full dim is always legal). For larger batches, guarantee >= 2 grid steps so
    # v7x's second TensorCore gets work, capped at MAX_BATCH_TILE.
    if batch <= 128:
        tb = batch
    else:
        tb = min(MAX_BATCH_TILE, _round_up(-(-batch // 2), 128))
    grid = (pl.cdiv(batch, tb),)   # ragged last tile is fine: rows are independent

    # One-time, tiny weight-side prep (no x copy, no batch padding).
    w1_c = w1.astype(jnp.bfloat16)                                        # (d, 256)
    w2_c = w2.astype(jnp.bfloat16)                                        # (256, 256)
    w3_p = jnp.zeros((HIDDEN, OUT_PAD), jnp.bfloat16).at[:, :1].set(
        w3.astype(jnp.bfloat16))                                          # (256, 128)
    b1_c = b1.astype(jnp.float32)
    b2_c = b2.astype(jnp.float32)
    b3_c = b3.astype(jnp.float32).reshape(1, 1)

    # Weights/biases: constant index_map -> single DMA, VMEM-resident across steps.
    resident = lambda shape: pl.BlockSpec(shape, lambda i: (0, 0))

    out = pl.pallas_call(
        critic_mlp_kernel,
        out_shape=jax.ShapeDtypeStruct((batch, 1), jnp.float32),
        grid=grid,
        in_specs=[
            pl.BlockSpec((tb, d), lambda i: (i, 0)),   # x: tiled over batch, natural dtype/shape
            resident((d, HIDDEN)),                     # W1 (true (d, 256) shape)
            resident((1, HIDDEN)),                     # b1
            resident((HIDDEN, HIDDEN)),                # W2
            resident((1, HIDDEN)),                     # b2
            resident((HIDDEN, OUT_PAD)),               # W3 (lane-padded RHS for the MXU)
            resident((1, 1)),                          # b3
        ],
        out_specs=pl.BlockSpec((tb, 1), lambda i: (i, 0)),
        compiler_params=pltpu.CompilerParams(
            dimension_semantics=("parallel",),         # batch tiles are independent
        ),
    )(x, w1_c, b1_c, w2_c, b2_c, w3_p, b3_c)

    return out


def init_params(key, input_dims):
    """Deterministic init mimicking PyTorch nn.Linear defaults (uniform +/- 1/sqrt(fan_in))."""
    k1, k2, k3, k4, k5, k6 = jax.random.split(key, 6)

    def uinit(k, shape, fan_in):
        bound = 1.0 / jnp.sqrt(float(fan_in))
        return jax.random.uniform(k, shape, jnp.float32, -bound, bound)

    w1 = uinit(k1, (input_dims, HIDDEN), input_dims)   # stored (in, out): x @ W == x @ W_pt.T
    b1 = uinit(k2, (1, HIDDEN), input_dims)
    w2 = uinit(k3, (HIDDEN, HIDDEN), HIDDEN)
    b2 = uinit(k4, (1, HIDDEN), HIDDEN)
    w3 = uinit(k5, (HIDDEN, 1), HIDDEN)
    b3 = uinit(k6, (1, 1), HIDDEN)
    return (w1, b1, w2, b2, w3, b3)


def critic_forward_ref(x, params, match_kernel_precision=True):
    """Pure-JAX reference. match_kernel_precision=True applies the same bf16 operand casts."""
    w1, b1, w2, b2, w3, b3 = params
    cast = (lambda a: a.astype(jnp.bfloat16)) if match_kernel_precision else (lambda a: a)
    h1 = jnp.maximum(jnp.dot(cast(x), cast(w1), preferred_element_type=jnp.float32) + b1, 0.0)
    h2 = jnp.maximum(jnp.dot(cast(h1), cast(w2), preferred_element_type=jnp.float32) + b2, 0.0)
    return jnp.dot(cast(h2), cast(w3), preferred_element_type=jnp.float32) + b3


if __name__ == "__main__":
    key = jax.random.PRNGKey(0)
    kx, kx2, kp = jax.random.split(key, 3)

    input_dims = 32  # small synthetic observation dimension

    params = init_params(kp, input_dims)

    # Case 1: small batch -> single-tile path (tb == batch).
    batch = 8
    x = jax.random.normal(kx, (batch, input_dims), jnp.float32)
    v = jax.block_until_ready(critic_forward(x, params))
    assert v.shape == (batch, 1), v.shape
    v_bf16 = critic_forward_ref(x, params, match_kernel_precision=True)
    v_f32 = critic_forward_ref(x, params, match_kernel_precision=False)
    assert jnp.allclose(v, v_bf16, atol=1e-2, rtol=1e-2), (v, v_bf16)
    assert jnp.allclose(v, v_f32, atol=5e-2, rtol=5e-2), (v, v_f32)

    # Case 2: batch > 128 -> multi-tile grid with a ragged last tile (tb=256, grid=2).
    batch2 = 260
    x2 = jax.random.normal(kx2, (batch2, input_dims), jnp.float32)
    v2 = jax.block_until_ready(critic_forward(x2, params))
    assert v2.shape == (batch2, 1), v2.shape
    v2_bf16 = critic_forward_ref(x2, params, match_kernel_precision=True)
    assert jnp.allclose(v2, v2_bf16, atol=1e-2, rtol=1e-2), (v2, v2_bf16)

    print("KERNEL_OK")
</pallas_src>

<mosaic_0001>
module attributes {stable_mosaic.version = 11 : i64} {
  func.func @critic_mlp_kernel(%arg0: i32, %arg1: memref<8x32xf32, #tpu.memory_space<vmem>>, %arg2: memref<32x256xbf16, #tpu.memory_space<vmem>>, %arg3: memref<1x256xf32, #tpu.memory_space<vmem>>, %arg4: memref<256x256xbf16, #tpu.memory_space<vmem>>, %arg5: memref<1x256xf32, #tpu.memory_space<vmem>>, %arg6: memref<256x128xbf16, #tpu.memory_space<vmem>>, %arg7: memref<1x1xf32, #tpu.memory_space<vmem>>, %arg8: memref<8x1xf32, #tpu.memory_space<vmem>>) attributes {dimension_semantics = [#tpu.dimension_semantics<parallel>], iteration_bounds = array<i64: 1>, scalar_prefetch = 0 : i64, scratch_operands = 0 : i64, tpu.core_type = #tpu.core_type<tc>, window_params = [{transform_indices = @transform_0, window_bounds = array<i64: 8, 32>}, {pipeline_mode = #tpu.pipeline_mode<synchronous>, transform_indices = @transform_1, window_bounds = array<i64: 32, 256>}, {pipeline_mode = #tpu.pipeline_mode<synchronous>, transform_indices = @transform_2, window_bounds = array<i64: 1, 256>}, {pipeline_mode = #tpu.pipeline_mode<synchronous>, transform_indices = @transform_3, window_bounds = array<i64: 256, 256>}, {pipeline_mode = #tpu.pipeline_mode<synchronous>, transform_indices = @transform_4, window_bounds = array<i64: 1, 256>}, {pipeline_mode = #tpu.pipeline_mode<synchronous>, transform_indices = @transform_5, window_bounds = array<i64: 256, 128>}, {pipeline_mode = #tpu.pipeline_mode<synchronous>, transform_indices = @transform_6, window_bounds = array<i64: 1, 1>}, {transform_indices = @transform_7, window_bounds = array<i64: 8, 1>}]} {
    %c0 = arith.constant 0 : index
    %c0_0 = arith.constant 0 : index
    %0 = vector.load %arg1[%c0, %c0_0] : memref<8x32xf32, #tpu.memory_space<vmem>>, vector<8x32xf32>
    %1 = arith.truncf %0 : vector<8x32xf32> to vector<8x32xbf16>
    %c0_1 = arith.constant 0 : index
    %c0_2 = arith.constant 0 : index
    %2 = vector.load %arg2[%c0_1, %c0_2] : memref<32x256xbf16, #tpu.memory_space<vmem>>, vector<32x256xbf16>
    %cst = arith.constant dense<0.000000e+00> : vector<8x256xf32>
    %3 = tpu.matmul %1, %2, %cst {dimension_numbers = #tpu.dot_dimension_numbers<[1], [0], [0], [1], [0, 0, 1, 1], [], []>} : vector<8x32xbf16>, vector<32x256xbf16>, vector<8x256xf32> -> vector<8x256xf32>
    %c0_3 = arith.constant 0 : index
    %c0_4 = arith.constant 0 : index
    %4 = vector.load %arg3[%c0_3, %c0_4] : memref<1x256xf32, #tpu.memory_space<vmem>>, vector<1x256xf32>
    %5 = vector.broadcast %4 : vector<1x256xf32> to vector<8x256xf32>
    %6 = arith.addf %3, %5 : vector<8x256xf32>
    %cst_5 = arith.constant 0.000000e+00 : f32
    %7 = vector.broadcast %cst_5 : f32 to vector<8x256xf32>
    %8 = arith.maximumf %6, %7 : vector<8x256xf32>
    %9 = arith.truncf %8 : vector<8x256xf32> to vector<8x256xbf16>
    %c0_6 = arith.constant 0 : index
    %c0_7 = arith.constant 0 : index
    %10 = vector.load %arg4[%c0_6, %c0_7] : memref<256x256xbf16, #tpu.memory_space<vmem>>, vector<256x256xbf16>
    %cst_8 = arith.constant dense<0.000000e+00> : vector<8x256xf32>
    %11 = tpu.matmul %9, %10, %cst_8 {dimension_numbers = #tpu.dot_dimension_numbers<[1], [0], [0], [1], [0, 0, 1, 1], [], []>} : vector<8x256xbf16>, vector<256x256xbf16>, vector<8x256xf32> -> vector<8x256xf32>
    %c0_9 = arith.constant 0 : index
    %c0_10 = arith.constant 0 : index
    %12 = vector.load %arg5[%c0_9, %c0_10] : memref<1x256xf32, #tpu.memory_space<vmem>>, vector<1x256xf32>
    %13 = vector.broadcast %12 : vector<1x256xf32> to vector<8x256xf32>
    %14 = arith.addf %11, %13 : vector<8x256xf32>
    %cst_11 = arith.constant 0.000000e+00 : f32
    %15 = vector.broadcast %cst_11 : f32 to vector<8x256xf32>
    %16 = arith.maximumf %14, %15 : vector<8x256xf32>
    %17 = arith.truncf %16 : vector<8x256xf32> to vector<8x256xbf16>
    %c0_12 = arith.constant 0 : index
    %c0_13 = arith.constant 0 : index
    %18 = vector.load %arg6[%c0_12, %c0_13] : memref<256x128xbf16, #tpu.memory_space<vmem>>, vector<256x128xbf16>
    %cst_14 = arith.constant dense<0.000000e+00> : vector<8x128xf32>
    %19 = tpu.matmul %17, %18, %cst_14 {dimension_numbers = #tpu.dot_dimension_numbers<[1], [0], [0], [1], [0, 0, 1, 1], [], []>} : vector<8x256xbf16>, vector<256x128xbf16>, vector<8x128xf32> -> vector<8x128xf32>
    %20 = vector.extract_strided_slice %19 {offsets = [0, 0], sizes = [8, 1], strides = [1, 1]} : vector<8x128xf32> to vector<8x1xf32>
    %c0_15 = arith.constant 0 : index
    %c0_16 = arith.constant 0 : index
    %21 = vector.load %arg7[%c0_15, %c0_16] : memref<1x1xf32, #tpu.memory_space<vmem>>, vector<1x1xf32>
    %22 = vector.broadcast %21 : vector<1x1xf32> to vector<8x1xf32>
    %23 = arith.addf %20, %22 : vector<8x1xf32>
    %c0_17 = arith.constant 0 : index
    %c0_18 = arith.constant 0 : index
    %24 = vector.load %arg8[%c0_17, %c0_18] : memref<8x1xf32, #tpu.memory_space<vmem>>, vector<8x1xf32>
    tpu.vector_store %arg8[%c0_17, %c0_18], %23 {strides = array<i32>} : memref<8x1xf32, #tpu.memory_space<vmem>>, vector<8x1xf32>,
    return
  }
  func.func @transform_0(%arg0: i32) -> (i32, i32) {
    %c0_i32 = arith.constant 0 : i32
    %c0_i32_0 = arith.constant 0 : i32
    return %arg0, %c0_i32 : i32, i32
  }
  func.func @transform_1(%arg0: i32) -> (i32, i32) {
    %c0_i32 = arith.constant 0 : i32
    %c0_i32_0 = arith.constant 0 : i32
    %c0_i32_1 = arith.constant 0 : i32
    return %c0_i32, %c0_i32_0 : i32, i32
  }
  func.func @transform_2(%arg0: i32) -> (i32, i32) {
    %c0_i32 = arith.constant 0 : i32
    %c0_i32_0 = arith.constant 0 : i32
    %c0_i32_1 = arith.constant 0 : i32
    return %c0_i32, %c0_i32_0 : i32, i32
  }
  func.func @transform_3(%arg0: i32) -> (i32, i32) {
    %c0_i32 = arith.constant 0 : i32
    %c0_i32_0 = arith.constant 0 : i32
    %c0_i32_1 = arith.constant 0 : i32
    return %c0_i32, %c0_i32_0 : i32, i32
  }
  func.func @transform_4(%arg0: i32) -> (i32, i32) {
    %c0_i32 = arith.constant 0 : i32
    %c0_i32_0 = arith.constant 0 : i32
    %c0_i32_1 = arith.constant 0 : i32
    return %c0_i32, %c0_i32_0 : i32, i32
  }
  func.func @transform_5(%arg0: i32) -> (i32, i32) {
    %c0_i32 = arith.constant 0 : i32
    %c0_i32_0 = arith.constant 0 : i32
    %c0_i32_1 = arith.constant 0 : i32
    return %c0_i32, %c0_i32_0 : i32, i32
  }
  func.func @transform_6(%arg0: i32) -> (i32, i32) {
    %c0_i32 = arith.constant 0 : i32
    %c0_i32_0 = arith.constant 0 : i32
    %c0_i32_1 = arith.constant 0 : i32
    return %c0_i32, %c0_i32_0 : i32, i32
  }
  func.func @transform_7(%arg0: i32) -> (i32, i32) {
    %c0_i32 = arith.constant 0 : i32
    %c0_i32_0 = arith.constant 0 : i32
    return %arg0, %c0_i32 : i32, i32
  }
}

</mosaic_0001>

<bundles_post_ra>
// kernel: critic_forward.1
= control target key start
LH: loop header
LB: loop body
LE: loop exit
PB: predicated region body
PF: predicated region fallthrough
CT: control target
= control target key end

     0   :  { %vm61_vm0 = vcmask 261120   ;;  %vm508_vm1 = vcmask 7168   ;;  %s1098_s1 = inlined_call_operand.vmem [shape: bf16[32,256], index: 1, kind: input, shape index: {}]   ;;  %s1099_s0 = inlined_call_operand.vmem [shape: f32[8,32], index: 0, kind: input, shape index: {}]   ;;  %s1100_s3 = inlined_call_operand.vmem [shape: bf16[256,256], index: 3, kind: input, shape index: {}]   ;;  %s1101_s5 = inlined_call_operand.vmem [shape: bf16[256,128], index: 5, kind: input, shape index: {}]   ;;  %s1102_s2 = inlined_call_operand.vmem [shape: f32[1,256], index: 2, kind: input, shape index: {}]   ;;  %s1103_s4 = inlined_call_operand.vmem [shape: f32[1,256], index: 4, kind: input, shape index: {}]   ;;  %s1104_s6 = inlined_call_operand.<no memory space> [shape: f32[1,1], index: 6, kind: input, shape index: {}]   ;;  %s1105_s7 = inlined_call_operand.vmem [shape: f32[8,1], index: 7, kind: output, shape index: {}]  }
   0x1   :  { %v524_v0 = vld [vmem:[%s1098_s1 + $0x10] sm:$0xf]  ;;  %v727_v1 = vld [vmem:[%s1098_s1 + $0x14] sm:$0xf0]  ;;  %v726_v2 = vld [vmem:[%s1098_s1 + $0x14] sm:$0xf] }
   0x2   :  { %v525_v3 = vor.u32 %v727_v1, %v524_v0  ;;  %v526_v4 = vld [vmem:[%s1098_s1 + $0x18] sm:$0xf0]  ;;  %v516_v5 = vld [vmem:[%s1098_s1] sm:$0xf]  ;;  %v725_v6 = vld [vmem:[%s1098_s1 + $0x4] sm:$0xf0] }
   0x3   :  { %v529_v7 = vor.u32 %v726_v2, %v526_v4  ;;  %v724_v8 = vld [vmem:[%s1098_s1 + $0x4] sm:$0xf]  ;;  %v518_v9 = vld [vmem:[%s1098_s1 + $0x8] sm:$0xf0]  ;;  %v517_v11 = vor.u32 %v725_v6, %v516_v5  ;;  %v590_v12 = vld [vmem:[%s1100_s3 + $0x70] sm:$0xf] }
   0x4   :  { %v29_v10 = vld [vmem:[%s1099_s0] sm:$0xff]  ;;  %71 = vmatpush.bf16.msra.mxu0 %v525_v3  ;;  %v743_v13 = vld [vmem:[%s1100_s3 + $0x74] sm:$0xf0]  ;;  %v654_v14 = vld [vmem:[%s1100_s3 + $0xf0] sm:$0xf]  ;;  %v521_v15 = vor.u32 %v724_v8, %v518_v9 }
   0x5   :  { %84 = vmatpush.bf16.msra.mxu1 %v529_v7  ;;  %v591_v16 = vor.u32 %v743_v13, %v590_v12  ;;  %v759_v17 = vld [vmem:[%s1100_s3 + $0xf4] sm:$0xf0]  ;;  %v742_v18 = vld [vmem:[%s1100_s3 + $0x74] sm:$0xf]  ;;  %v592_v19 = vld [vmem:[%s1100_s3 + $0x78] sm:$0xf0]  ;;  %v30_v25 = vpack.c.bf16 %v29_v10, %v29_v10 }
   0x6   :  { %v655_v20 = vor.u32 %v759_v17, %v654_v14  ;;  %v595_v21 = vor.u32 %v742_v18, %v592_v19  ;;  %v758_v22 = vld [vmem:[%s1100_s3 + $0xf4] sm:$0xf]  ;;  %v656_v23 = vld [vmem:[%s1100_s3 + $0xf8] sm:$0xf0]  ;;  %v582_v24 = vld [vmem:[%s1100_s3 + $0x60] sm:$0xf] }
   0x7   :  { %293 = vmatpush.bf16.msra.mxu2 %v591_v16  ;;  %v659_v26 = vor.u32 %v758_v22, %v656_v23  ;;  %v741_v27 = vld [vmem:[%s1100_s3 + $0x64] sm:$0xf0]  ;;  %v646_v28 = vld [vmem:[%s1100_s3 + $0xe0] sm:$0xf]  ;;  %v740_v32 = vld [vmem:[%s1100_s3 + $0x64] sm:$0xf] }
   0x8   :  { %v757_v29 = vld [vmem:[%s1100_s3 + $0xe4] sm:$0xf0]  ;;  %72 = vmatpush.bf16.msra.mxu0 %v517_v11  ;;  %306 = vmatpush.bf16.msra.mxu3 %v655_v20  ;;  %v583_v30 = vor.u32 %v741_v27, %v582_v24  ;;  %v584_v33 = vld [vmem:[%s1100_s3 + $0x68] sm:$0xf0]  ;;  %v756_v34 = vld [vmem:[%s1100_s3 + $0xe4] sm:$0xf] }
   0x9   :  { %v647_v31 = vor.u32 %v757_v29, %v646_v28  ;;  %85 = vmatpush.bf16.msra.mxu1 %v521_v15  ;;  %v587_v35 = vor.u32 %v740_v32, %v584_v33  ;;  %v648_v36 = vld [vmem:[%s1100_s3 + $0xe8] sm:$0xf0]  ;;  %v574_v37 = vld [vmem:[%s1100_s3 + $0x50] sm:$0xf]  ;;  %v739_v38 = vld [vmem:[%s1100_s3 + $0x54] sm:$0xf0] }
   0xa   :  { %v651_v39 = vor.u32 %v756_v34, %v648_v36  ;;  %v638_v40 = vld [vmem:[%s1100_s3 + $0xd0] sm:$0xf]  ;;  %v755_v41 = vld [vmem:[%s1100_s3 + $0xd4] sm:$0xf0]  ;;  %v738_v42 = vld [vmem:[%s1100_s3 + $0x54] sm:$0xf]  ;;  %v575_v43 = vor.u32 %v739_v38, %v574_v37 }
   0xb   :  { %530 = vmatmul.msk.bf16.vlgmr.msra.gmra.mxu0 %vm61_vm0, %v30_v25  ;;  %294 = vmatpush.bf16.msra.mxu2 %v583_v30  ;;  %v576_v44 = vld [vmem:[%s1100_s3 + $0x58] sm:$0xf0]  ;;  %v754_v45 = vld [vmem:[%s1100_s3 + $0xd4] sm:$0xf]  ;;  %v639_v47 = vor.u32 %v755_v41, %v638_v40  ;;  %v566_v48 = vld [vmem:[%s1100_s3 + $0x40] sm:$0xf] }
   0xc   :  { %319 = vmatpush.bf16.msrb.mxu0 %v595_v21  ;;  %v640_v46 = vld [vmem:[%s1100_s3 + $0xd8] sm:$0xf0]  ;;  %531 = vmatmul.msk.bf16.vlgmr.msra.gmra.mxu1 %vm61_vm0, %v30_v25  ;;  %v737_v49 = vld [vmem:[%s1100_s3 + $0x44] sm:$0xf0]  ;;  %v579_v50 = vor.u32 %v738_v42, %v576_v44  ;;  %v630_v51 = vld [vmem:[%s1100_s3 + $0xc0] sm:$0xf] }
   0xd   :  { %332 = vmatpush.bf16.msrb.mxu1 %v659_v26  ;;  %307 = vmatpush.bf16.msra.mxu3 %v647_v31  ;;  %v753_v52 = vld [vmem:[%s1100_s3 + $0xc4] sm:$0xf0]  ;;  %v643_v53 = vor.u32 %v754_v45, %v640_v46  ;;  %v736_v54 = vld [vmem:[%s1100_s3 + $0x44] sm:$0xf]  ;;  %v568_v55 = vld [vmem:[%s1100_s3 + $0x48] sm:$0xf0]  ;;  %v567_v56 = vor.u32 %v737_v49, %v566_v48 }
   0xe   :  { %v752_v57 = vld [vmem:[%s1100_s3 + $0xc4] sm:$0xf]  ;;  %v632_v58 = vld [vmem:[%s1100_s3 + $0xc8] sm:$0xf0]  ;;  %v631_v59 = vor.u32 %v753_v52, %v630_v51  ;;  %v558_v60 = vld [vmem:[%s1100_s3 + $0x30] sm:$0xf]  ;;  %v571_v62 = vor.u32 %v736_v54, %v568_v55 }
   0xf   :  { %295 = vmatpush.bf16.msra.mxu2 %v575_v43  ;;  %v735_v61 = vld [vmem:[%s1100_s3 + $0x34] sm:$0xf0]  ;;  %v622_v63 = vld [vmem:[%s1100_s3 + $0xb0] sm:$0xf]  ;;  %v635_v1 = vor.u32 %v752_v57, %v632_v58  ;;  %v734_v2 = vld [vmem:[%s1100_s3 + $0x34] sm:$0xf] }
  0x10   :  { %320 = vmatpush.bf16.msrb.mxu0 %v587_v35  ;;  %v751_v0 = vld [vmem:[%s1100_s3 + $0xb4] sm:$0xf0]  ;;  %v560_v3 = vld [vmem:[%s1100_s3 + $0x38] sm:$0xf0]  ;;  %v559_v4 = vor.u32 %v735_v61, %v558_v60  ;;  %v750_v5 = vld [vmem:[%s1100_s3 + $0xb4] sm:$0xf] }
  0x11   :  { %333 = vmatpush.bf16.msrb.mxu1 %v651_v39  ;;  %308 = vmatpush.bf16.msra.mxu3 %v639_v47  ;;  %v624_v6 = vld [vmem:[%s1100_s3 + $0xb8] sm:$0xf0]  ;;  %v623_v7 = vor.u32 %v751_v0, %v622_v63  ;;  %v550_v8 = vld [vmem:[%s1100_s3 + $0x20] sm:$0xf]  ;;  %v733_v9 = vld [vmem:[%s1100_s3 + $0x24] sm:$0xf0]  ;;  %v563_v10 = vor.u32 %v734_v2, %v560_v3 }
  0x12   :  { %v614_v11 = vld [vmem:[%s1100_s3 + $0xa0] sm:$0xf]  ;;  %v749_v12 = vld [vmem:[%s1100_s3 + $0xa4] sm:$0xf0]  ;;  %v627_v13 = vor.u32 %v750_v5, %v624_v6  ;;  %v732_v14 = vld [vmem:[%s1100_s3 + $0x24] sm:$0xf]  ;;  %v551_v16 = vor.u32 %v733_v9, %v550_v8 }
  0x13   :  { %296 = vmatpush.bf16.msra.mxu2 %v567_v56  ;;  %v552_v15 = vld [vmem:[%s1100_s3 + $0x28] sm:$0xf0]  ;;  %v748_v17 = vld [vmem:[%s1100_s3 + $0xa4] sm:$0xf]  ;;  %v615_v19 = vor.u32 %v749_v12, %v614_v11  ;;  %v542_v22 = vld [vmem:[%s1100_s3 + $0x10] sm:$0xf] }
  0x14   :  { %321 = vmatpush.bf16.msrb.mxu0 %v579_v50  ;;  %v616_v18 = vld [vmem:[%s1100_s3 + $0xa8] sm:$0xf0]  ;;  %v555_v20 = vor.u32 %v732_v14, %v552_v15  ;;  %v731_v23 = vld [vmem:[%s1100_s3 + $0x14] sm:$0xf0]  ;;  %v606_v24 = vld [vmem:[%s1100_s3 + $0x90] sm:$0xf] }
  0x15   :  { %334 = vmatpush.bf16.msrb.mxu1 %v643_v53  ;;  %309 = vmatpush.bf16.msra.mxu3 %v631_v59  ;;  %v619_v21 = vor.u32 %v748_v17, %v616_v18  ;;  %v543_v25 = vor.u32 %v731_v23, %v542_v22  ;;  %v747_v26 = vld [vmem:[%s1100_s3 + $0x94] sm:$0xf0]  ;;  %v730_v27 = vld [vmem:[%s1100_s3 + $0x14] sm:$0xf]  ;;  %v544_v28 = vld [vmem:[%s1100_s3 + $0x18] sm:$0xf0] }
  0x16   :  { %v607_v29 = vor.u32 %v747_v26, %v606_v24  ;;  %v547_v30 = vor.u32 %v730_v27, %v544_v28  ;;  %v746_v31 = vld [vmem:[%s1100_s3 + $0x94] sm:$0xf]  ;;  %v608_v32 = vld [vmem:[%s1100_s3 + $0x98] sm:$0xf0]  ;;  %v534_v34 = vld [vmem:[%s1100_s3] sm:$0xf] }
  0x17   :  { %297 = vmatpush.bf16.msra.mxu2 %v559_v4  ;;  %v611_v33 = vor.u32 %v746_v31, %v608_v32  ;;  %v729_v35 = vld [vmem:[%s1100_s3 + $0x4] sm:$0xf0]  ;;  %v598_v36 = vld [vmem:[%s1100_s3 + $0x80] sm:$0xf]  ;;  %v728_v39 = vld [vmem:[%s1100_s3 + $0x4] sm:$0xf] }
  0x18   :  { %322 = vmatpush.bf16.msrb.mxu0 %v571_v62  ;;  %v535_v37 = vor.u32 %v729_v35, %v534_v34  ;;  %v745_v38 = vld [vmem:[%s1100_s3 + $0x84] sm:$0xf0]  ;;  %v536_v40 = vld [vmem:[%s1100_s3 + $0x8] sm:$0xf0]  ;;  %v744_v43 = vld [vmem:[%s1100_s3 + $0x84] sm:$0xf] }
  0x19   :  { %335 = vmatpush.bf16.msrb.mxu1 %v635_v1  ;;  %310 = vmatpush.bf16.msra.mxu3 %v623_v7  ;;  %v599_v41 = vor.u32 %v745_v38, %v598_v36  ;;  %v539_v42 = vor.u32 %v728_v39, %v536_v40  ;;  %v600_v44 = vld [vmem:[%s1100_s3 + $0x88] sm:$0xf0]  ;;  %v775_v46 = vld [vmem:[%s1101_s5 + $0x78] sm:$0xff]  ;;  %v774_v48 = vld [vmem:[%s1101_s5 + $0x70] sm:$0xff] }
  0x1a   :  { %v603_v45 = vor.u32 %v744_v43, %v600_v44  ;;  %v767_v47 = vld [vmem:[%s1101_s5 + $0x38] sm:$0xff]  ;;  %v766_v49 = vld [vmem:[%s1101_s5 + $0x30] sm:$0xff]  ;;  %v773_v50 = vld [vmem:[%s1101_s5 + $0x68] sm:$0xff] }
  0x1b   :  { %298 = vmatpush.bf16.msra.mxu2 %v551_v16  ;;  %v765_v51 = vld [vmem:[%s1101_s5 + $0x28] sm:$0xff]  ;;  %v772_v52 = vld [vmem:[%s1101_s5 + $0x60] sm:$0xff]  ;;  %v771_v54 = vld [vmem:[%s1101_s5 + $0x58] sm:$0xff] }
  0x1c   :  { %323 = vmatpush.bf16.msrb.mxu0 %v563_v10  ;;  %v764_v53 = vld [vmem:[%s1101_s5 + $0x20] sm:$0xff]  ;;  %v770_v56 = vld [vmem:[%s1101_s5 + $0x50] sm:$0xff]  ;;  %v763_v5 = vld [vmem:[%s1101_s5 + $0x18] sm:$0xff] }
  0x1d   :  { %336 = vmatpush.bf16.msrb.mxu1 %v627_v13  ;;  %311 = vmatpush.bf16.msra.mxu3 %v615_v19  ;;  %v35_v55 = vld [vmem:[%s1102_s2] sm:$0x3]  ;;  %v769_v6 = vld [vmem:[%s1101_s5 + $0x48] sm:$0xff]  ;;  %v762_v7 = vld [vmem:[%s1101_s5 + $0x10] sm:$0xff] }
  0x1e   :  { %v37_v57 = vperm.slane %v35_v55, 0  ;;  %v38_v58 = vperm.slane %v35_v55, 1  ;;  %v768_v8 = vld [vmem:[%s1101_s5 + $0x40] sm:$0xff]  ;;  %v761_v9 = vld [vmem:[%s1101_s5 + $0x8] sm:$0xff] }
  0x1f   :  { %299 = vmatpush.bf16.msra.mxu2 %v543_v25  ;;  %v760_v10 = vld [vmem:[%s1101_s5] sm:$0xff] }
  0x20   :  { %324 = vmatpush.bf16.msrb.mxu0 %v555_v20  ;;  %v127_v11 = vld [vmem:[%s1103_s4] sm:$0x3] }
  0x21   :  { %337 = vmatpush.bf16.msrb.mxu1 %v619_v21  ;;  %312 = vmatpush.bf16.msra.mxu3 %v607_v29  ;;  %v130_v12 = vperm.slane %v127_v11, 1  ;;  %v129_v17 = vperm.slane %v127_v11, 0 }
  0x23   :  { %300 = vmatpush.bf16.msra.mxu2 %v535_v37 }
  0x24   :  { %325 = vmatpush.bf16.msrb.mxu0 %v547_v30  ;;  %v12_v30 = vstv %s1104_s6 }
  0x25   :  { %338 = vmatpush.bf16.msrb.mxu1 %v611_v33  ;;  %313 = vmatpush.bf16.msra.mxu3 %v599_v41  ;;  %13 = vst [vmem:[#allocation2] sm:$0x1] %v12_v30 }
  0x27   :  { %477 = vmatpush.bf16.msrb.mxu2 %v767_v47 }
  0x28   :  { %326 = vmatpush.bf16.msrb.mxu0 %v539_v42 }
  0x29   :  { %339 = vmatpush.bf16.msrb.mxu1 %v603_v45  ;;  %490 = vmatpush.bf16.msrb.mxu3 %v775_v46 }
  0x2b   :  { %478 = vmatpush.bf16.msrb.mxu2 %v766_v49 }
  0x2c   :  { %v776_v32 = vld [vmem:[#allocation2] ss:$0 sm:$0xff] }
  0x2d   :  { %491 = vmatpush.bf16.msrb.mxu3 %v774_v48 }
  0x2f   :  { %479 = vmatpush.bf16.msrb.mxu2 %v765_v51 }
  0x31   :  { %492 = vmatpush.bf16.msrb.mxu3 %v773_v50 }
  0x33   :  { %480 = vmatpush.bf16.msrb.mxu2 %v764_v53 }
  0x35   :  { %493 = vmatpush.bf16.msrb.mxu3 %v772_v52 }
  0x37   :  { %481 = vmatpush.bf16.msrb.mxu2 %v763_v5 }
  0x39   :  { %494 = vmatpush.bf16.msrb.mxu3 %v771_v54 }
  0x3b   :  { %482 = vmatpush.bf16.msrb.mxu2 %v762_v7 }
  0x3d   :  { %495 = vmatpush.bf16.msrb.mxu3 %v770_v56 }
  0x3f   :  { %483 = vmatpush.bf16.msrb.mxu2 %v761_v9 }
  0x41   :  { %496 = vmatpush.bf16.msrb.mxu3 %v769_v6 }
  0x43   :  { %484 = vmatpush.bf16.msrb.mxu2 %v760_v10 }
  0x45   :  { %497 = vmatpush.bf16.msrb.mxu3 %v768_v8 }
  0x88   :  { %v74_v59 = vpop.f32.mrf.mxu0 }
  0x89   :  { %v75_v60 = vadd.f32 %v74_v59, %v37_v57  ;;  %v87_v61 = vpop.f32.mrf.mxu1 }
  0x8a   :  { %v88_v62 = vadd.f32 %v87_v61, %v38_v58 }
  0x8b   :  { %v91_v63 = vmax.f32 %v75_v60, 0.0 }
  0x8c   :  { %v92_v0 = vmax.f32 %v88_v62, 0.0 }
  0x8d   :  { %v93_v1 = vpack.c.bf16 %v91_v63, %v91_v63 }
  0x8e   :  { %v94_v2 = vpack.c.bf16 %v92_v0, %v92_v0 }
  0x8f   :  { %301 = vmatmul.bf16.vlgmr.msra.gmra.mxu2 %v93_v1  ;;  %327 = vmatmul.bf16.vlgmr.msrb.gmra.mxu0 %v93_v1 }
  0x90   :  { %314 = vmatmul.bf16.vlgmr.msra.gmra.mxu3 %v94_v2  ;;  %340 = vmatmul.bf16.vlgmr.msrb.gmra.mxu1 %v94_v2  ;;  %v76_v3 = vpop.f32.mrf.mxu0 }
  0x91   :  { %v89_v4 = vpop.f32.mrf.mxu1 }
 0x10c   :  { %v328_v13 = vpop.f32.mrf.mxu0 }
 0x10d   :  { %v329_v14 = vadd.f32 %v328_v13, %v130_v12  ;;  %v341_v15 = vpop.f32.mrf.mxu1 }
 0x10f   :  { %v342_v16 = vadd.f32 %v341_v15, %v329_v14 }
 0x111   :  { %v346_v18 = vmax.f32 %v342_v16, 0.0 }
 0x112   :  { %v302_v19 = vpop.f32.mrf.mxu2 }
 0x113   :  { %v348_v20 = vpack.c.bf16 %v346_v18, %v346_v18  ;;  %v303_v21 = vadd.f32 %v302_v19, %v129_v17  ;;  %v315_v22 = vpop.f32.mrf.mxu3 }
 0x114   :  { %v330_v23 = vpop.f32.mrf.mxu0 }
 0x115   :  { %v316_v24 = vadd.f32 %v315_v22, %v303_v21  ;;  %v343_v25 = vpop.f32.mrf.mxu1  ;;  %498 = vmatmul.bf16.vlgmr.msrb.gmra.mxu3 %v348_v20 }
 0x117   :  { %v345_v26 = vmax.f32 %v316_v24, 0.0 }
 0x119   :  { %v347_v27 = vpack.c.bf16 %v345_v26, %v345_v26 }
 0x11a   :  { %v304_v28 = vpop.f32.mrf.mxu2 }
 0x11b   :  { %v317_v29 = vpop.f32.mrf.mxu3  ;;  %485 = vmatmul.bf16.vlgmr.msrb.gmra.mxu2 %v347_v27 }
 0x198   :  { %v499_v31 = vpop.f32.mrf.mxu3 }
 0x19e   :  { %v486_v33 = vpop.f32.mrf.mxu2 }
 0x19f   :  { %v500_v34 = vadd.f32 %v499_v31, %v486_v33 }
 0x1a0   :  { %v501_v35 = vpop.f32.mrf.mxu3 }
 0x1a1   :  { %v507_v36 = vadd.f32 %v776_v32, %v500_v34 }
 0x1a3   :  { %509 = vst.msk [vmem:[%s1105_s7] sm:$0xff] %vm508_vm1, %v507_v36 }
 0x1a6   :  { %v488_v37 = vpop.f32.mrf.mxu2 }

</bundles_post_ra>
